<compile_context>
chip_gen: v7x
topology: tpu7x:2x2x1
jax: 0.10.0
libtpu: 0.0.40
codegen_flags: <defaults>
</compile_context>

<pallas_src>
import functools

import jax
import jax.numpy as jnp
from jax.experimental import pallas as pl
from jax.experimental.pallas import tpu as pltpu

HIDDEN_SIZE = 32           # hidden_size of FidelityMLP
OUTPUT_SIZE = HIDDEN_SIZE  # output_size defaults to hidden_size
LN_EPS = 1e-5


def _round_up(n, m):
    return ((n + m - 1) // m) * m


def _layernorm(h, gamma, beta):
    # PyTorch LayerNorm over the last dim (biased variance), eps=1e-5.
    # E[h^2] - mean^2 keeps the two XLU reductions independent.
    mean = jnp.mean(h, axis=-1, keepdims=True)
    mean_sq = jnp.mean(h * h, axis=-1, keepdims=True)
    var = mean_sq - mean * mean
    inv = jax.lax.rsqrt(var + LN_EPS)
    return (h - mean) * inv * gamma + beta


def fidelity_mlp_kernel(
    x_ref,
    w1_ref, b1_ref, g1_ref, be1_ref,
    w2_ref, b2_ref, g2_ref, be2_ref,
    w3_ref, b3_ref, g3_ref, be3_ref,
    wo_ref, bo_ref,
    out_ref,
):
    x = x_ref[...]                                         # (Bt, 1) f32

    # Linear(1, 128): contraction dim is 1 -> plain broadcast multiply (VPU).
    h = x * w1_ref[...] + b1_ref[...]                      # (Bt, 128)
    h = _layernorm(h, g1_ref[...], be1_ref[...])
    h = h * jax.nn.sigmoid(h)                              # SiLU

    # Linear(128, 256): bf16 operands on the MXU, f32 accumulation.
    h = jnp.dot(h.astype(jnp.bfloat16), w2_ref[...],
                preferred_element_type=jnp.float32) + b2_ref[...]
    h = _layernorm(h, g2_ref[...], be2_ref[...])
    h = h * jax.nn.sigmoid(h)                              # SiLU

    # Linear(256, hidden)
    h = jnp.dot(h.astype(jnp.bfloat16), w3_ref[...],
                preferred_element_type=jnp.float32) + b3_ref[...]
    h = _layernorm(h, g3_ref[...], be3_ref[...])
    h = jnp.tanh(h)                                        # Tanh

    # output_proj (weights zero-padded to 128 lanes -> lane-dense store).
    out = jnp.dot(h.astype(jnp.bfloat16), wo_ref[...],
                  preferred_element_type=jnp.float32) + bo_ref[...]
    out_ref[...] = out.astype(out_ref.dtype)


def init_params(key, hidden_size=HIDDEN_SIZE, output_size=OUTPUT_SIZE,
                dtype=jnp.float32):
    """Deterministic init matching FidelityMLP._init_weights:
    Linear weights ~ N(0, 0.01), biases = 0, LayerNorm gamma=1, beta=0."""
    k1, k2, k3, k4 = jax.random.split(key, 4)
    std = 0.01
    params = {
        # Stored transposed relative to torch (in_features, out_features)
        # so the kernel can do h @ W directly.
        "w1": jax.random.normal(k1, (1, 128), dtype) * std,
        "b1": jnp.zeros((1, 128), dtype),
        "g1": jnp.ones((1, 128), dtype),
        "be1": jnp.zeros((1, 128), dtype),
        "w2": jax.random.normal(k2, (128, 256), dtype) * std,
        "b2": jnp.zeros((1, 256), dtype),
        "g2": jnp.ones((1, 256), dtype),
        "be2": jnp.zeros((1, 256), dtype),
        "w3": jax.random.normal(k3, (256, hidden_size), dtype) * std,
        "b3": jnp.zeros((1, hidden_size), dtype),
        "g3": jnp.ones((1, hidden_size), dtype),
        "be3": jnp.zeros((1, hidden_size), dtype),
        "wo": jax.random.normal(k4, (hidden_size, output_size), dtype) * std,
        "bo": jnp.zeros((1, output_size), dtype),
    }
    return params


@functools.partial(jax.jit, static_argnames=("target_dim", "b_tile_max"))
def fidelity_mlp_forward(x, params, target_dim=None, b_tile_max=512):
    """x: (B, 1) float32. Returns (B, output_size) or (B, target_dim)."""
    B = x.shape[0]
    output_size = params["wo"].shape[1]

    # --- Batch tiling: grid over the batch dim. Tile <= 512 rows keeps
    # VMEM use tiny even on v7x (64 MiB) while filling the MXU on v6e/v7x.
    b_tile = min(b_tile_max, _round_up(B, 8))
    b_padded = _round_up(B, b_tile)
    if b_padded != B:
        x = jnp.pad(x, ((0, b_padded - B), (0, 0)))

    # --- Lane-dense output: pad output_proj to a multiple of 128 lanes.
    n_pad = _round_up(max(output_size, 128), 128)
    wo = jnp.pad(params["wo"], ((0, 0), (0, n_pad - output_size)))
    bo = jnp.pad(params["bo"], ((0, 0), (0, n_pad - output_size)))

    # --- MXU operands in bf16 (accumulation stays f32 inside the kernel).
    w2 = params["w2"].astype(jnp.bfloat16)
    w3 = params["w3"].astype(jnp.bfloat16)
    wo = wo.astype(jnp.bfloat16)

    weight_args = [
        params["w1"], params["b1"], params["g1"], params["be1"],
        w2, params["b2"], params["g2"], params["be2"],
        w3, params["b3"], params["g3"], params["be3"],
        wo, bo,
    ]

    # x/out are tiled along the batch grid; all params use a constant
    # index_map so they are DMA'd once and stay resident in VMEM.
    in_specs = [pl.BlockSpec((b_tile, 1), lambda i: (i, 0))]
    in_specs += [pl.BlockSpec(a.shape, lambda i: (0, 0)) for a in weight_args]
    out_specs = pl.BlockSpec((b_tile, n_pad), lambda i: (i, 0))

    out = pl.pallas_call(
        fidelity_mlp_kernel,
        out_shape=jax.ShapeDtypeStruct((b_padded, n_pad), x.dtype),
        grid_spec=pltpu.PrefetchScalarGridSpec(
            num_scalar_prefetch=0,
            grid=(b_padded // b_tile,),
            in_specs=in_specs,
            out_specs=out_specs,
        ),
        compiler_params=pltpu.CompilerParams(
            dimension_semantics=("parallel",)),
    )(x, *weight_args)

    # Drop batch padding and lane padding.
    out = out[:B, :output_size]

    # _adjust_dimension: pure glue (pad with zeros or slice) in plain JAX.
    if target_dim is not None and target_dim != output_size:
        if target_dim > output_size:
            pad = jnp.zeros((B, target_dim - output_size), dtype=out.dtype)
            out = jnp.concatenate([out, pad], axis=-1)
        else:
            out = out[..., :target_dim]
    return out


def _reference_forward(x, params):
    """Pure-JAX f32 reference for correctness checking."""
    def ln(h, g, b):
        mean = jnp.mean(h, -1, keepdims=True)
        var = jnp.mean((h - mean) ** 2, -1, keepdims=True)
        return (h - mean) / jnp.sqrt(var + LN_EPS) * g + b

    h = x @ params["w1"] + params["b1"]
    h = ln(h, params["g1"], params["be1"])
    h = h * jax.nn.sigmoid(h)
    h = h @ params["w2"] + params["b2"]
    h = ln(h, params["g2"], params["be2"])
    h = h * jax.nn.sigmoid(h)
    h = h @ params["w3"] + params["b3"]
    h = ln(h, params["g3"], params["be3"])
    h = jnp.tanh(h)
    return h @ params["wo"] + params["bo"]


if __name__ == "__main__":
    key = jax.random.PRNGKey(0)
    pkey, xkey = jax.random.split(key)

    params = init_params(pkey)

    # Small-shape run (single tile).
    B = 8
    x = jax.random.uniform(xkey, (B, 1), dtype=jnp.float32)
    out = jax.block_until_ready(fidelity_mlp_forward(x, params))
    ref = _reference_forward(x, params)
    assert out.shape == (B, OUTPUT_SIZE), out.shape
    # bf16 MXU operands (f32 accumulation) -> looser tolerance vs f32 ref.
    assert jnp.allclose(out, ref, atol=1e-2, rtol=1e-2), "mismatch vs reference"

    # Multi-tile, ragged-batch run to exercise the batch grid + pipeline.
    xb = jax.random.uniform(jax.random.PRNGKey(1), (1030, 1), dtype=jnp.float32)
    outb = jax.block_until_ready(fidelity_mlp_forward(xb, params))
    refb = _reference_forward(xb, params)
    assert outb.shape == (1030, OUTPUT_SIZE), outb.shape
    assert jnp.allclose(outb, refb, atol=1e-2, rtol=1e-2), "mismatch (tiled) vs reference"

    # Exercise the target_dim adjustment paths (glue, outside the kernel).
    out_pad = jax.block_until_ready(fidelity_mlp_forward(x, params, target_dim=48))
    out_cut = jax.block_until_ready(fidelity_mlp_forward(x, params, target_dim=16))
    assert out_pad.shape == (B, 48) and out_cut.shape == (B, 16)
    assert jnp.allclose(out_pad[:, :OUTPUT_SIZE], out, atol=1e-6)
    assert jnp.allclose(out_pad[:, OUTPUT_SIZE:], 0.0)

    print("KERNEL_OK")
</pallas_src>

<mosaic_0001>
module attributes {stable_mosaic.version = 11 : i64} {
  func.func @fidelity_mlp_kernel(%arg0: i32, %arg1: memref<8x1xf32, #tpu.memory_space<vmem>>, %arg2: memref<1x128xf32, #tpu.memory_space<vmem>>, %arg3: memref<1x128xf32, #tpu.memory_space<vmem>>, %arg4: memref<1x128xf32, #tpu.memory_space<vmem>>, %arg5: memref<1x128xf32, #tpu.memory_space<vmem>>, %arg6: memref<128x256xbf16, #tpu.memory_space<vmem>>, %arg7: memref<1x256xf32, #tpu.memory_space<vmem>>, %arg8: memref<1x256xf32, #tpu.memory_space<vmem>>, %arg9: memref<1x256xf32, #tpu.memory_space<vmem>>, %arg10: memref<256x32xbf16, #tpu.memory_space<vmem>>, %arg11: memref<1x32xf32, #tpu.memory_space<vmem>>, %arg12: memref<1x32xf32, #tpu.memory_space<vmem>>, %arg13: memref<1x32xf32, #tpu.memory_space<vmem>>, %arg14: memref<32x128xbf16, #tpu.memory_space<vmem>>, %arg15: memref<1x128xf32, #tpu.memory_space<vmem>>, %arg16: memref<8x128xf32, #tpu.memory_space<vmem>>) attributes {dimension_semantics = [#tpu.dimension_semantics<parallel>], iteration_bounds = array<i64: 1>, scalar_prefetch = 0 : i64, scratch_operands = 0 : i64, tpu.core_type = #tpu.core_type<tc>, window_params = [{transform_indices = @transform_0, window_bounds = array<i64: 8, 1>}, {pipeline_mode = #tpu.pipeline_mode<synchronous>, transform_indices = @transform_1, window_bounds = array<i64: 1, 128>}, {pipeline_mode = #tpu.pipeline_mode<synchronous>, transform_indices = @transform_2, window_bounds = array<i64: 1, 128>}, {pipeline_mode = #tpu.pipeline_mode<synchronous>, transform_indices = @transform_3, window_bounds = array<i64: 1, 128>}, {pipeline_mode = #tpu.pipeline_mode<synchronous>, transform_indices = @transform_4, window_bounds = array<i64: 1, 128>}, {pipeline_mode = #tpu.pipeline_mode<synchronous>, transform_indices = @transform_5, window_bounds = array<i64: 128, 256>}, {pipeline_mode = #tpu.pipeline_mode<synchronous>, transform_indices = @transform_6, window_bounds = array<i64: 1, 256>}, {pipeline_mode = #tpu.pipeline_mode<synchronous>, transform_indices = @transform_7, window_bounds = array<i64: 1, 256>}, {pipeline_mode = #tpu.pipeline_mode<synchronous>, transform_indices = @transform_8, window_bounds = array<i64: 1, 256>}, {pipeline_mode = #tpu.pipeline_mode<synchronous>, transform_indices = @transform_9, window_bounds = array<i64: 256, 32>}, {pipeline_mode = #tpu.pipeline_mode<synchronous>, transform_indices = @transform_10, window_bounds = array<i64: 1, 32>}, {pipeline_mode = #tpu.pipeline_mode<synchronous>, transform_indices = @transform_11, window_bounds = array<i64: 1, 32>}, {pipeline_mode = #tpu.pipeline_mode<synchronous>, transform_indices = @transform_12, window_bounds = array<i64: 1, 32>}, {pipeline_mode = #tpu.pipeline_mode<synchronous>, transform_indices = @transform_13, window_bounds = array<i64: 32, 128>}, {pipeline_mode = #tpu.pipeline_mode<synchronous>, transform_indices = @transform_14, window_bounds = array<i64: 1, 128>}, {transform_indices = @transform_15, window_bounds = array<i64: 8, 128>}]} {
    %c0 = arith.constant 0 : index
    %c0_0 = arith.constant 0 : index
    %0 = vector.load %arg1[%c0, %c0_0] : memref<8x1xf32, #tpu.memory_space<vmem>>, vector<8x1xf32>
    %c0_1 = arith.constant 0 : index
    %c0_2 = arith.constant 0 : index
    %1 = vector.load %arg2[%c0_1, %c0_2] : memref<1x128xf32, #tpu.memory_space<vmem>>, vector<1x128xf32>
    %2 = vector.broadcast %0 : vector<8x1xf32> to vector<8x128xf32>
    %3 = vector.broadcast %1 : vector<1x128xf32> to vector<8x128xf32>
    %4 = arith.mulf %2, %3 : vector<8x128xf32>
    %c0_3 = arith.constant 0 : index
    %c0_4 = arith.constant 0 : index
    %5 = vector.load %arg3[%c0_3, %c0_4] : memref<1x128xf32, #tpu.memory_space<vmem>>, vector<1x128xf32>
    %6 = vector.broadcast %5 : vector<1x128xf32> to vector<8x128xf32>
    %7 = arith.addf %4, %6 : vector<8x128xf32>
    %c0_5 = arith.constant 0 : index
    %c0_6 = arith.constant 0 : index
    %8 = vector.load %arg4[%c0_5, %c0_6] : memref<1x128xf32, #tpu.memory_space<vmem>>, vector<1x128xf32>
    %c0_7 = arith.constant 0 : index
    %c0_8 = arith.constant 0 : index
    %9 = vector.load %arg5[%c0_7, %c0_8] : memref<1x128xf32, #tpu.memory_space<vmem>>, vector<1x128xf32>
    %cst = arith.constant dense<0.000000e+00> : vector<8xf32>
    %10 = vector.multi_reduction <add>, %7, %cst [1] : vector<8x128xf32> to vector<8xf32>
    %11 = vector.shape_cast %10 : vector<8xf32> to vector<8x1xf32>
    %cst_9 = arith.constant 1.280000e+02 : f32
    %12 = vector.broadcast %cst_9 : f32 to vector<8x1xf32>
    %13 = arith.divf %11, %12 : vector<8x1xf32>
    %14 = arith.mulf %7, %7 : vector<8x128xf32>
    %cst_10 = arith.constant dense<0.000000e+00> : vector<8xf32>
    %15 = vector.multi_reduction <add>, %14, %cst_10 [1] : vector<8x128xf32> to vector<8xf32>
    %16 = vector.shape_cast %15 : vector<8xf32> to vector<8x1xf32>
    %cst_11 = arith.constant 1.280000e+02 : f32
    %17 = vector.broadcast %cst_11 : f32 to vector<8x1xf32>
    %18 = arith.divf %16, %17 : vector<8x1xf32>
    %19 = arith.mulf %13, %13 : vector<8x1xf32>
    %20 = arith.subf %18, %19 : vector<8x1xf32>
    %cst_12 = arith.constant 9.99999974E-6 : f32
    %21 = vector.broadcast %cst_12 : f32 to vector<8x1xf32>
    %22 = arith.addf %20, %21 : vector<8x1xf32>
    %23 = math.rsqrt %22 : vector<8x1xf32>
    %24 = vector.broadcast %13 : vector<8x1xf32> to vector<8x128xf32>
    %25 = arith.subf %7, %24 : vector<8x128xf32>
    %26 = vector.broadcast %23 : vector<8x1xf32> to vector<8x128xf32>
    %27 = arith.mulf %25, %26 : vector<8x128xf32>
    %28 = vector.broadcast %8 : vector<1x128xf32> to vector<8x128xf32>
    %29 = arith.mulf %27, %28 : vector<8x128xf32>
    %30 = vector.broadcast %9 : vector<1x128xf32> to vector<8x128xf32>
    %31 = arith.addf %29, %30 : vector<8x128xf32>
    %32 = arith.negf %31 : vector<8x128xf32>
    %33 = math.exp %32 : vector<8x128xf32>
    %cst_13 = arith.constant 1.000000e+00 : f32
    %34 = vector.broadcast %cst_13 : f32 to vector<8x128xf32>
    %35 = arith.addf %34, %33 : vector<8x128xf32>
    %36 = arith.divf %34, %35 : vector<8x128xf32>
    %37 = arith.mulf %31, %36 : vector<8x128xf32>
    %38 = arith.truncf %37 : vector<8x128xf32> to vector<8x128xbf16>
    %c0_14 = arith.constant 0 : index
    %c0_15 = arith.constant 0 : index
    %39 = vector.load %arg6[%c0_14, %c0_15] : memref<128x256xbf16, #tpu.memory_space<vmem>>, vector<128x256xbf16>
    %cst_16 = arith.constant dense<0.000000e+00> : vector<8x256xf32>
    %40 = tpu.matmul %38, %39, %cst_16 {dimension_numbers = #tpu.dot_dimension_numbers<[1], [0], [0], [1], [0, 0, 1, 1], [], []>} : vector<8x128xbf16>, vector<128x256xbf16>, vector<8x256xf32> -> vector<8x256xf32>
    %c0_17 = arith.constant 0 : index
    %c0_18 = arith.constant 0 : index
    %41 = vector.load %arg7[%c0_17, %c0_18] : memref<1x256xf32, #tpu.memory_space<vmem>>, vector<1x256xf32>
    %42 = vector.broadcast %41 : vector<1x256xf32> to vector<8x256xf32>
    %43 = arith.addf %40, %42 : vector<8x256xf32>
    %c0_19 = arith.constant 0 : index
    %c0_20 = arith.constant 0 : index
    %44 = vector.load %arg8[%c0_19, %c0_20] : memref<1x256xf32, #tpu.memory_space<vmem>>, vector<1x256xf32>
    %c0_21 = arith.constant 0 : index
    %c0_22 = arith.constant 0 : index
    %45 = vector.load %arg9[%c0_21, %c0_22] : memref<1x256xf32, #tpu.memory_space<vmem>>, vector<1x256xf32>
    %cst_23 = arith.constant dense<0.000000e+00> : vector<8xf32>
    %46 = vector.multi_reduction <add>, %43, %cst_23 [1] : vector<8x256xf32> to vector<8xf32>
    %47 = vector.shape_cast %46 : vector<8xf32> to vector<8x1xf32>
    %cst_24 = arith.constant 2.560000e+02 : f32
    %48 = vector.broadcast %cst_24 : f32 to vector<8x1xf32>
    %49 = arith.divf %47, %48 : vector<8x1xf32>
    %50 = arith.mulf %43, %43 : vector<8x256xf32>
    %cst_25 = arith.constant dense<0.000000e+00> : vector<8xf32>
    %51 = vector.multi_reduction <add>, %50, %cst_25 [1] : vector<8x256xf32> to vector<8xf32>
    %52 = vector.shape_cast %51 : vector<8xf32> to vector<8x1xf32>
    %cst_26 = arith.constant 2.560000e+02 : f32
    %53 = vector.broadcast %cst_26 : f32 to vector<8x1xf32>
    %54 = arith.divf %52, %53 : vector<8x1xf32>
    %55 = arith.mulf %49, %49 : vector<8x1xf32>
    %56 = arith.subf %54, %55 : vector<8x1xf32>
    %cst_27 = arith.constant 9.99999974E-6 : f32
    %57 = vector.broadcast %cst_27 : f32 to vector<8x1xf32>
    %58 = arith.addf %56, %57 : vector<8x1xf32>
    %59 = math.rsqrt %58 : vector<8x1xf32>
    %60 = vector.broadcast %49 : vector<8x1xf32> to vector<8x256xf32>
    %61 = arith.subf %43, %60 : vector<8x256xf32>
    %62 = vector.broadcast %59 : vector<8x1xf32> to vector<8x256xf32>
    %63 = arith.mulf %61, %62 : vector<8x256xf32>
    %64 = vector.broadcast %44 : vector<1x256xf32> to vector<8x256xf32>
    %65 = arith.mulf %63, %64 : vector<8x256xf32>
    %66 = vector.broadcast %45 : vector<1x256xf32> to vector<8x256xf32>
    %67 = arith.addf %65, %66 : vector<8x256xf32>
    %68 = arith.negf %67 : vector<8x256xf32>
    %69 = math.exp %68 : vector<8x256xf32>
    %cst_28 = arith.constant 1.000000e+00 : f32
    %70 = vector.broadcast %cst_28 : f32 to vector<8x256xf32>
    %71 = arith.addf %70, %69 : vector<8x256xf32>
    %72 = arith.divf %70, %71 : vector<8x256xf32>
    %73 = arith.mulf %67, %72 : vector<8x256xf32>
    %74 = arith.truncf %73 : vector<8x256xf32> to vector<8x256xbf16>
    %c0_29 = arith.constant 0 : index
    %c0_30 = arith.constant 0 : index
    %75 = vector.load %arg10[%c0_29, %c0_30] : memref<256x32xbf16, #tpu.memory_space<vmem>>, vector<256x32xbf16>
    %cst_31 = arith.constant dense<0.000000e+00> : vector<8x32xf32>
    %76 = tpu.matmul %74, %75, %cst_31 {dimension_numbers = #tpu.dot_dimension_numbers<[1], [0], [0], [1], [0, 0, 1, 1], [], []>} : vector<8x256xbf16>, vector<256x32xbf16>, vector<8x32xf32> -> vector<8x32xf32>
    %c0_32 = arith.constant 0 : index
    %c0_33 = arith.constant 0 : index
    %77 = vector.load %arg11[%c0_32, %c0_33] : memref<1x32xf32, #tpu.memory_space<vmem>>, vector<1x32xf32>
    %78 = vector.broadcast %77 : vector<1x32xf32> to vector<8x32xf32>
    %79 = arith.addf %76, %78 : vector<8x32xf32>
    %c0_34 = arith.constant 0 : index
    %c0_35 = arith.constant 0 : index
    %80 = vector.load %arg12[%c0_34, %c0_35] : memref<1x32xf32, #tpu.memory_space<vmem>>, vector<1x32xf32>
    %c0_36 = arith.constant 0 : index
    %c0_37 = arith.constant 0 : index
    %81 = vector.load %arg13[%c0_36, %c0_37] : memref<1x32xf32, #tpu.memory_space<vmem>>, vector<1x32xf32>
    %cst_38 = arith.constant dense<0.000000e+00> : vector<8xf32>
    %82 = vector.multi_reduction <add>, %79, %cst_38 [1] : vector<8x32xf32> to vector<8xf32>
    %83 = vector.shape_cast %82 : vector<8xf32> to vector<8x1xf32>
    %cst_39 = arith.constant 3.200000e+01 : f32
    %84 = vector.broadcast %cst_39 : f32 to vector<8x1xf32>
    %85 = arith.divf %83, %84 : vector<8x1xf32>
    %86 = arith.mulf %79, %79 : vector<8x32xf32>
    %cst_40 = arith.constant dense<0.000000e+00> : vector<8xf32>
    %87 = vector.multi_reduction <add>, %86, %cst_40 [1] : vector<8x32xf32> to vector<8xf32>
    %88 = vector.shape_cast %87 : vector<8xf32> to vector<8x1xf32>
    %cst_41 = arith.constant 3.200000e+01 : f32
    %89 = vector.broadcast %cst_41 : f32 to vector<8x1xf32>
    %90 = arith.divf %88, %89 : vector<8x1xf32>
    %91 = arith.mulf %85, %85 : vector<8x1xf32>
    %92 = arith.subf %90, %91 : vector<8x1xf32>
    %cst_42 = arith.constant 9.99999974E-6 : f32
    %93 = vector.broadcast %cst_42 : f32 to vector<8x1xf32>
    %94 = arith.addf %92, %93 : vector<8x1xf32>
    %95 = math.rsqrt %94 : vector<8x1xf32>
    %96 = vector.broadcast %85 : vector<8x1xf32> to vector<8x32xf32>
    %97 = arith.subf %79, %96 : vector<8x32xf32>
    %98 = vector.broadcast %95 : vector<8x1xf32> to vector<8x32xf32>
    %99 = arith.mulf %97, %98 : vector<8x32xf32>
    %100 = vector.broadcast %80 : vector<1x32xf32> to vector<8x32xf32>
    %101 = arith.mulf %99, %100 : vector<8x32xf32>
    %102 = vector.broadcast %81 : vector<1x32xf32> to vector<8x32xf32>
    %103 = arith.addf %101, %102 : vector<8x32xf32>
    %104 = math.tanh %103 : vector<8x32xf32>
    %105 = arith.truncf %104 : vector<8x32xf32> to vector<8x32xbf16>
    %c0_43 = arith.constant 0 : index
    %c0_44 = arith.constant 0 : index
    %106 = vector.load %arg14[%c0_43, %c0_44] : memref<32x128xbf16, #tpu.memory_space<vmem>>, vector<32x128xbf16>
    %cst_45 = arith.constant dense<0.000000e+00> : vector<8x128xf32>
    %107 = tpu.matmul %105, %106, %cst_45 {dimension_numbers = #tpu.dot_dimension_numbers<[1], [0], [0], [1], [0, 0, 1, 1], [], []>} : vector<8x32xbf16>, vector<32x128xbf16>, vector<8x128xf32> -> vector<8x128xf32>
    %c0_46 = arith.constant 0 : index
    %c0_47 = arith.constant 0 : index
    %108 = vector.load %arg15[%c0_46, %c0_47] : memref<1x128xf32, #tpu.memory_space<vmem>>, vector<1x128xf32>
    %109 = vector.broadcast %108 : vector<1x128xf32> to vector<8x128xf32>
    %110 = arith.addf %107, %109 : vector<8x128xf32>
    %c0_48 = arith.constant 0 : index
    %c0_49 = arith.constant 0 : index
    %111 = vector.load %arg16[%c0_48, %c0_49] : memref<8x128xf32, #tpu.memory_space<vmem>>, vector<8x128xf32>
    tpu.vector_store %arg16[%c0_48, %c0_49], %110 {strides = array<i32>} : memref<8x128xf32, #tpu.memory_space<vmem>>, vector<8x128xf32>,
    return
  }
  func.func @transform_0(%arg0: i32) -> (i32, i32) {
    %c0_i32 = arith.constant 0 : i32
    %c0_i32_0 = arith.constant 0 : i32
    return %arg0, %c0_i32 : i32, i32
  }
  func.func @transform_1(%arg0: i32) -> (i32, i32) {
    %c0_i32 = arith.constant 0 : i32
    %c0_i32_0 = arith.constant 0 : i32
    %c0_i32_1 = arith.constant 0 : i32
    return %c0_i32, %c0_i32_0 : i32, i32
  }
  func.func @transform_2(%arg0: i32) -> (i32, i32) {
    %c0_i32 = arith.constant 0 : i32
    %c0_i32_0 = arith.constant 0 : i32
    %c0_i32_1 = arith.constant 0 : i32
    return %c0_i32, %c0_i32_0 : i32, i32
  }
  func.func @transform_3(%arg0: i32) -> (i32, i32) {
    %c0_i32 = arith.constant 0 : i32
    %c0_i32_0 = arith.constant 0 : i32
    %c0_i32_1 = arith.constant 0 : i32
    return %c0_i32, %c0_i32_0 : i32, i32
  }
  func.func @transform_4(%arg0: i32) -> (i32, i32) {
    %c0_i32 = arith.constant 0 : i32
    %c0_i32_0 = arith.constant 0 : i32
    %c0_i32_1 = arith.constant 0 : i32
    return %c0_i32, %c0_i32_0 : i32, i32
  }
  func.func @transform_5(%arg0: i32) -> (i32, i32) {
    %c0_i32 = arith.constant 0 : i32
    %c0_i32_0 = arith.constant 0 : i32
    %c0_i32_1 = arith.constant 0 : i32
    return %c0_i32, %c0_i32_0 : i32, i32
  }
  func.func @transform_6(%arg0: i32) -> (i32, i32) {
    %c0_i32 = arith.constant 0 : i32
    %c0_i32_0 = arith.constant 0 : i32
    %c0_i32_1 = arith.constant 0 : i32
    return %c0_i32, %c0_i32_0 : i32, i32
  }
  func.func @transform_7(%arg0: i32) -> (i32, i32) {
    %c0_i32 = arith.constant 0 : i32
    %c0_i32_0 = arith.constant 0 : i32
    %c0_i32_1 = arith.constant 0 : i32
    return %c0_i32, %c0_i32_0 : i32, i32
  }
  func.func @transform_8(%arg0: i32) -> (i32, i32) {
    %c0_i32 = arith.constant 0 : i32
    %c0_i32_0 = arith.constant 0 : i32
    %c0_i32_1 = arith.constant 0 : i32
    return %c0_i32, %c0_i32_0 : i32, i32
  }
  func.func @transform_9(%arg0: i32) -> (i32, i32) {
    %c0_i32 = arith.constant 0 : i32
    %c0_i32_0 = arith.constant 0 : i32
    %c0_i32_1 = arith.constant 0 : i32
    return %c0_i32, %c0_i32_0 : i32, i32
  }
  func.func @transform_10(%arg0: i32) -> (i32, i32) {
    %c0_i32 = arith.constant 0 : i32
    %c0_i32_0 = arith.constant 0 : i32
    %c0_i32_1 = arith.constant 0 : i32
    return %c0_i32, %c0_i32_0 : i32, i32
  }
  func.func @transform_11(%arg0: i32) -> (i32, i32) {
    %c0_i32 = arith.constant 0 : i32
    %c0_i32_0 = arith.constant 0 : i32
    %c0_i32_1 = arith.constant 0 : i32
    return %c0_i32, %c0_i32_0 : i32, i32
  }
  func.func @transform_12(%arg0: i32) -> (i32, i32) {
    %c0_i32 = arith.constant 0 : i32
    %c0_i32_0 = arith.constant 0 : i32
    %c0_i32_1 = arith.constant 0 : i32
    return %c0_i32, %c0_i32_0 : i32, i32
  }
  func.func @transform_13(%arg0: i32) -> (i32, i32) {
    %c0_i32 = arith.constant 0 : i32
    %c0_i32_0 = arith.constant 0 : i32
    %c0_i32_1 = arith.constant 0 : i32
    return %c0_i32, %c0_i32_0 : i32, i32
  }
  func.func @transform_14(%arg0: i32) -> (i32, i32) {
    %c0_i32 = arith.constant 0 : i32
    %c0_i32_0 = arith.constant 0 : i32
    %c0_i32_1 = arith.constant 0 : i32
    return %c0_i32, %c0_i32_0 : i32, i32
  }
  func.func @transform_15(%arg0: i32) -> (i32, i32) {
    %c0_i32 = arith.constant 0 : i32
    %c0_i32_0 = arith.constant 0 : i32
    return %arg0, %c0_i32 : i32, i32
  }
}

</mosaic_0001>

<bundles_post_ra>
// kernel: fidelity_mlp_forward.1
= control target key start
LH: loop header
LB: loop body
LE: loop exit
PB: predicated region body
PF: predicated region fallthrough
CT: control target
= control target key end

     0   :  { %v785_v1 = vmov 0   ;;  %s1032_s0 = inlined_call_operand.vmem [shape: f32[8,1], index: 0, kind: input, shape index: {}]   ;;  %s1033_s1 = inlined_call_operand.vmem [shape: f32[1,128], index: 1, kind: input, shape index: {}]   ;;  %s1034_s2 = inlined_call_operand.vmem [shape: f32[1,128], index: 2, kind: input, shape index: {}]   ;;  %s1035_s3 = inlined_call_operand.vmem [shape: f32[1,128], index: 3, kind: input, shape index: {}]   ;;  %s1036_s4 = inlined_call_operand.vmem [shape: f32[1,128], index: 4, kind: input, shape index: {}]   ;;  %s1037_s5 = inlined_call_operand.vmem [shape: bf16[128,256], index: 5, kind: input, shape index: {}]   ;;  %s1038_s6 = inlined_call_operand.vmem [shape: f32[1,256], index: 6, kind: input, shape index: {}]   ;;  %s1039_s7 = inlined_call_operand.vmem [shape: f32[1,256], index: 7, kind: input, shape index: {}]   ;;  %s1040_s8 = inlined_call_operand.vmem [shape: f32[1,256], index: 8, kind: input, shape index: {}]   ;;  %s1041_s9 = inlined_call_operand.vmem [shape: bf16[256,32], index: 9, kind: input, shape index: {}]   ;;  %s1042_s10 = inlined_call_operand.vmem [shape: f32[1,32], index: 10, kind: input, shape index: {}]   ;;  %s1043_s11 = inlined_call_operand.vmem [shape: f32[1,32], index: 11, kind: input, shape index: {}]   ;;  %s1044_s12 = inlined_call_operand.vmem [shape: f32[1,32], index: 12, kind: input, shape index: {}]   ;;  %s1045_s13 = inlined_call_operand.vmem [shape: bf16[32,128], index: 13, kind: input, shape index: {}]   ;;  %s1046_s14 = inlined_call_operand.vmem [shape: f32[1,128], index: 14, kind: input, shape index: {}]   ;;  %s1047_s15 = inlined_call_operand.hbm [shape: f32[8,128], index: 15, kind: output, shape index: {}]  }
   0x1   :  { %v52_v0 = vld [vmem:[%s1032_s0] sm:$0xff]  ;;  %698 = vset.pattern.permute.xlu0 %v785_v1  ;;  %252 = vmatprep.mubr.bf16.mxu0 %v785_v1 }
   0x2   :  { %56 = vperm.xlu0 %698, %v52_v0  }
   0x3   :  { %20 = vsyncpa [#allocation3], 0  ;;  %v615_v2 = vld [vmem:[%s1033_s1] ss:$0 sm:$0xff]  ;;  %v699_v8 = vld [vmem:[%s1037_s5 + $0x4] ss:$8 sps:$4 sm:$0xff]   ;;  %v130_v44 = vlaneseq }
   0x4   :  { %v616_v3 = vld [vmem:[%s1034_s2] ss:$0 sm:$0xff]  ;;  %v702_v10 = vld [vmem:[%s1037_s5 + $0x14] ss:$8 sps:$4 sm:$0xff]   ;;  %220 = vmatprep.subr.bf16.mxu0 %v699_v8  ;;  %v704_v11 = vld [vmem:[%s1037_s5 + $0x10] ss:$8 sps:$4 sm:$0xff]  }
   0x5   :  { %v701_v9 = vld [vmem:[%s1037_s5] ss:$8 sps:$4 sm:$0xff]   ;;  %v705_v12 = vld [vmem:[%s1037_s5 + $0x24] ss:$8 sps:$4 sm:$0xff]   ;;  %v708_v14 = vld [vmem:[%s1037_s5 + $0x34] ss:$8 sps:$4 sm:$0xff]  }
   0x6   :  { %221 = vmatpush1.bf16.msra.mxu0 %v701_v9  ;;  %v707_v13 = vld [vmem:[%s1037_s5 + $0x20] ss:$8 sps:$4 sm:$0xff]   ;;  %v710_v15 = vld [vmem:[%s1037_s5 + $0x30] ss:$8 sps:$4 sm:$0xff]   ;;  %v711_v16 = vld [vmem:[%s1037_s5 + $0x44] ss:$8 sps:$4 sm:$0xff]  }
   0x7   :  { %222 = vmatprep.subr.bf16.mxu0 %v702_v10  ;;  %v713_v17 = vld [vmem:[%s1037_s5 + $0x40] ss:$8 sps:$4 sm:$0xff]   ;;  %v714_v18 = vld [vmem:[%s1037_s5 + $0x54] ss:$8 sps:$4 sm:$0xff]   ;;  %v716_v19 = vld [vmem:[%s1037_s5 + $0x50] ss:$8 sps:$4 sm:$0xff]  }
   0x8   :  { %v717_v20 = vld [vmem:[%s1037_s5 + $0x64] ss:$8 sps:$4 sm:$0xff]   ;;  %v719_v21 = vld [vmem:[%s1037_s5 + $0x60] ss:$8 sps:$4 sm:$0xff]   ;;  %v720_v22 = vld [vmem:[%s1037_s5 + $0x74] ss:$8 sps:$4 sm:$0xff]  }
   0x9   :  { %v722_v23 = vld [vmem:[%s1037_s5 + $0x70] ss:$8 sps:$4 sm:$0xff]   ;;  %v617_v33 = vld [vmem:[%s1035_s3] ss:$0 sm:$0xff]  ;;  %v131_v45 = vshrl.u32 %v130_v44, 7  ;;  %v725_v63 = vld [vmem:[%s1041_s9 + $0x48] sm:$0xff]  }
   0xa   :  { %223 = vmatpush1.bf16.msra.mxu0 %v704_v11  ;;  %v618_v35 = vld [vmem:[%s1036_s4] ss:$0 sm:$0xff]  ;;  %v726_v0 = vld [vmem:[%s1041_s9 + $0x8] sm:$0xff]   ;;  %v727_v1 = vld [vmem:[%s1041_s9 + $0x50] sm:$0xff]   ;;  %vm501_vm0 = vcmask 261120   ;;  %vm787_vm1 = vmmov 0  }
   0xb   :  { %224 = vmatprep.subr.bf16.mxu0 %v705_v12  ;;  %v932_v46 = vsub.s32 0, %v131_v45  ;;  %v128_v47 = vld [vmem:[%s1038_s6] sm:$0x3]  ;;  %v937_v48 = vsub.s32 1, %v131_v45  ;;  %v734_v8 = vld [vmem:[%s1041_s9 + $0x28] sm:$0xff]   ;;  %v735_v9 = vld [vmem:[%s1041_s9 + $0x70] sm:$0xff]  }
   0xc   :  { %v723_v61 = vld [vmem:[%s1041_s9 + $0x40] sm:$0xff]   ;;  %v736_v10 = vld [vmem:[%s1041_s9 + $0x30] sm:$0xff]   ;;  %v737_v11 = vld [vmem:[%s1041_s9 + $0x78] sm:$0xff]   ;;  %s788_s5 = smov [#allocation2]  }
   0xd   :  { %v133_v49 = vrot.slane %v128_v47, %v932_v46  ;;  %v137_v50 = vrot.slane %v128_v47, %v937_v48  ;;  %v724_v62 = vld [vmem:[%s1041_s9] sm:$0xff]   ;;  %661 = vmatprep.subr.bf16.mxu1 %v723_v61  ;;  %v738_v12 = vld [vmem:[%s1041_s9 + $0x38] sm:$0xff]   ;;  %s607_s4 = sshll.u32 %s788_s5, 4  ;;  %s608_s4 = int_to_ptr.vmem [resolvable:$true] %s607_s4 }
   0xe   :  { %225 = vmatpush1.bf16.msra.mxu0 %v707_v13  ;;  %662 = vmatpush3.bf16.msra.mxu1 %v724_v62  ;;  %p766_p1 = scmp.lt.s32.totalorder %s608_s4, %s608_s4 }
   0xf   :  { %226 = vmatprep.subr.bf16.mxu0 %v708_v14  ;;  %663 = vmatprep.subr.bf16.mxu1 %v725_v63 }
  0x12   :  { %227 = vmatpush1.bf16.msra.mxu0 %v710_v15  ;;  %664 = vmatpush3.bf16.msra.mxu1 %v726_v0 }
  0x13   :  { %228 = vmatprep.subr.bf16.mxu0 %v711_v16  ;;  %665 = vmatprep.subr.bf16.mxu1 %v727_v1 }
  0x16   :  { %229 = vmatpush1.bf16.msra.mxu0 %v713_v17 }
  0x17   :  { %230 = vmatprep.subr.bf16.mxu0 %v714_v18 }
  0x1a   :  { %231 = vmatpush1.bf16.msra.mxu0 %v716_v19 }
  0x1b   :  { %232 = vmatprep.subr.bf16.mxu0 %v717_v20  ;;  %v261_v20 = vld [vmem:[%s1039_s7] sm:$0x3] }
  0x1e   :  { %233 = vmatpush1.bf16.msra.mxu0 %v719_v21  ;;  %v262_v21 = vld [vmem:[%s1040_s8] sm:$0x3] }
  0x1f   :  { %234 = vmatprep.subr.bf16.mxu0 %v720_v22 }
  0x22   :  { %235 = vmatpush1.bf16.msra.mxu0 %v722_v23 }
  0x81   :  { %v57_v4 = vpop.permute.xlu0 %56 }
  0x82   :  { %v65_v5 = vmul.f32 %v615_v2, %v57_v4  ;;  %v728_v2 = vld [vmem:[%s1041_s9 + $0x10] sm:$0xff]   ;;  %v730_v4 = vld [vmem:[%s1041_s9 + $0x18] sm:$0xff]  }
  0x83   :  { %666 = vmatpush3.bf16.msra.mxu1 %v728_v2 }
  0x84   :  { %v73_v6 = vadd.f32 %v616_v3, %v65_v5  ;;  %v729_v3 = vld [vmem:[%s1041_s9 + $0x58] sm:$0xff]   ;;  %v731_v5 = vld [vmem:[%s1041_s9 + $0x60] sm:$0xff]  }
  0x85   :  { %667 = vmatprep.subr.bf16.mxu1 %v729_v3 }
  0x86   :  { %76 = vadd.xlane.f32.xlu0 %v73_v6  ;;  %v80_v7 = vmul.f32 %v73_v6, %v73_v6 }
  0x87   :  { %668 = vmatpush3.bf16.msra.mxu1 %v730_v4 }
  0x88   :  { %81 = vadd.xlane.f32.xlu1 %v80_v7  ;;  %669 = vmatprep.subr.bf16.mxu1 %v731_v5  ;;  %v733_v7 = vld [vmem:[%s1041_s9 + $0x68] sm:$0xff]   ;;  %v655_v5 = vld [vmem:[%s1043_s11] ss:$0 sm:$0xff]  ;;  %s761_s11 = scalar_lea.vmem %s608_s4, 128 }
  0x89   :  { %p762_p0 = scmp.ne.s32.totalorder %s608_s4, %s761_s11  ;;  %p767_p2 = scmp.lt.s32.totalorder %s761_s11, %s761_s11 }
  0x8b   :  { %p768_p3 = por %p767_p2, %p766_p1 }
  0x8d   :  { %p769_p4 = pnand %p768_p3, %p762_p0 }
 0x113   :  { %v77_v24 = vpop.xlane.xlu0 %76 }
 0x114   :  { %v79_v25 = vmul.f32 0.0078125, %v77_v24  ;;  %v286_v24 = vrot.slane %v261_v20, %v932_v46 }
 0x115   :  { %v82_v26 = vpop.xlane.xlu1 %81 }
 0x116   :  { %v84_v27 = vmul.f32 %v79_v25, %v79_v25  ;;  %v83_v28 = vmul.f32 0.0078125, %v82_v26  ;;  %v88_v31 = vsub.f32 %v73_v6, %v79_v25  ;;  %v732_v6 = vld [vmem:[%s1041_s9 + $0x20] sm:$0xff]   ;;  %v290_v25 = vrot.slane %v261_v20, %v937_v48 }
 0x117   :  { %670 = vmatpush3.bf16.msra.mxu1 %v732_v6 }
 0x118   :  { %v85_v29 = vsub.f32 %v83_v28, %v84_v27  ;;  %671 = vmatprep.subr.bf16.mxu1 %v733_v7  ;;  %v299_v28 = vrot.slane %v262_v21, %v932_v46  ;;  %v656_v7 = vld [vmem:[%s1044_s12] ss:$0 sm:$0xff] }
 0x11a   :  { %v86_v30 = vadd.f32 1e-05, %v85_v29  ;;  %v303_v29 = vrot.slane %v262_v21, %v937_v48  ;;  %v638_v48 = vld [vmem:[%s1042_s10] ss:$0 sm:$0xff] }
 0x11b   :  { %672 = vmatpush3.bf16.msra.mxu1 %v734_v8 }
 0x11c   :  { %741 = vrsqrt.f32 %v86_v30  ;;  %673 = vmatprep.subr.bf16.mxu1 %v735_v9 }
 0x11f   :  { %674 = vmatpush3.bf16.msra.mxu1 %v736_v10 }
 0x120   :  { %675 = vmatprep.subr.bf16.mxu1 %v737_v11 }
 0x123   :  { %676 = vmatpush3.bf16.msra.mxu1 %v738_v12  ;;  %v657_v12 = vld [vmem:[%s1046_s14] ss:$0 sm:$0xff] }
 0x126   :  { %v742_v32 = vpop.eup %741 }
 0x127   :  { %v89_v34 = vmul.f32 %v742_v32, %v88_v31 }
 0x129   :  { %v96_v36 = vmul.f32 %v617_v33, %v89_v34 }
 0x12b   :  { %v103_v37 = vadd.f32 %v618_v35, %v96_v36 }
 0x12d   :  { %v619_v38 = vmul.f32 -1.442695, %v103_v37 }
 0x12f   :  { %743 = vpow2.f32 %v619_v38 }
 0x139   :  { %v744_v39 = vpop.eup %743 }
 0x13a   :  { %v107_v40 = vadd.f32 1.0, %v744_v39 }
 0x13c   :  { %745 = vrcp.f32 %v107_v40 }
 0x146   :  { %v746_v41 = vpop.eup %745 }
 0x147   :  { %v110_v42 = vmul.f32 %v746_v41, %v103_v37 }
 0x149   :  { %v111_v43 = vpack.c.bf16 %v110_v42, %v110_v42 }
 0x14b   :  { %253 = vmatmul.mubr.bf16.vlgmr.msra.gmra.mrb[0].mxu0 %v111_v43 }
 0x21e   :  { %v254_v51 = vpop.f32.mrb[0].mxu0 }
 0x21f   :  { %v255_v52 = vadd.f32 %v254_v51, %v133_v49  ;;  %v256_v53 = vpop.f32.mrb[1].mxu0 }
 0x220   :  { %v257_v54 = vadd.f32 %v256_v53, %v137_v50  ;;  %v258_v55 = vpop.f32.mrb[2].mxu0 }
 0x221   :  { %v259_v56 = vpop.f32.mrb[3].mxu0  ;;  %v268_v58 = vmul.f32 %v255_v52, %v255_v52 }
 0x222   :  { %v263_v57 = vadd.f32 %v257_v54, %v255_v52  ;;  %v269_v59 = vmul.f32 %v257_v54, %v257_v54 }
 0x224   :  { %264 = vadd.xlane.f32.xlu1 %v263_v57  ;;  %v270_v60 = vadd.f32 %v269_v59, %v268_v58  ;;  %v739_v57 = vld [vmem:[%s1045_s13] sm:$0xff]   ;;  %v786_v58 = vmov 0.0   ;;  %v740_v59 = vld [vmem:[%s1045_s13 + $0x8] sm:$0xff]  }
 0x225   :  { %686 = vmatprep.subr.bf16.mxu0 %v786_v58  ;;  %690 = vmatprep.mubr.msk.bf16.mxu0 %vm787_vm1, %v786_v58 }
 0x226   :  { %687 = vmatpush3.bf16.msra.mxu0 %v739_v57 }
 0x227   :  { %688 = vmatprep.subr.bf16.mxu0 %v786_v58 }
 0x228   :  { %271 = vadd.xlane.f32.xlu1 %v270_v60 }
 0x22a   :  { %689 = vmatpush3.bf16.msra.mxu0 %v740_v59 }
 0x2b1   :  { %v265_v13 = vpop.xlane.xlu1 %264 }
 0x2b2   :  { %v267_v14 = vmul.f32 0.00390625, %v265_v13 }
 0x2b4   :  { %v274_v16 = vmul.f32 %v267_v14, %v267_v14  ;;  %v278_v22 = vsub.f32 %v255_v52, %v267_v14  ;;  %v279_v23 = vsub.f32 %v257_v54, %v267_v14 }
 0x2b5   :  { %v272_v15 = vpop.xlane.xlu1 %271 }
 0x2b6   :  { %v273_v17 = vmul.f32 0.00390625, %v272_v15 }
 0x2b8   :  { %v275_v18 = vsub.f32 %v273_v17, %v274_v16 }
 0x2ba   :  { %v276_v19 = vadd.f32 1e-05, %v275_v18 }
 0x2bc   :  { %747 = vrsqrt.f32 %v276_v19 }
 0x2c6   :  { %v748_v26 = vpop.eup %747 }
 0x2c7   :  { %v281_v27 = vmul.f32 %v748_v26, %v279_v23  ;;  %v280_v30 = vmul.f32 %v748_v26, %v278_v22 }
 0x2c9   :  { %v294_v31 = vmul.f32 %v290_v25, %v281_v27  ;;  %v293_v32 = vmul.f32 %v286_v24, %v280_v30 }
 0x2cb   :  { %v307_v33 = vadd.f32 %v303_v29, %v294_v31  ;;  %v306_v34 = vadd.f32 %v299_v28, %v293_v32 }
 0x2cd   :  { %v637_v35 = vmul.f32 -1.442695, %v307_v33  ;;  %v636_v36 = vmul.f32 -1.442695, %v306_v34 }
 0x2cf   :  { %749 = vpow2.f32 %v637_v35 }
 0x2d0   :  { %751 = vpow2.f32 %v636_v36 }
 0x2d9   :  { %v750_v37 = vpop.eup %749 }
 0x2da   :  { %v752_v38 = vpop.eup %751  ;;  %v315_v39 = vadd.f32 1.0, %v750_v37 }
 0x2db   :  { %v314_v40 = vadd.f32 1.0, %v752_v38 }
 0x2dc   :  { %753 = vrcp.f32 %v315_v39 }
 0x2dd   :  { %755 = vrcp.f32 %v314_v40 }
 0x2e6   :  { %v754_v41 = vpop.eup %753 }
 0x2e7   :  { %v756_v42 = vpop.eup %755  ;;  %v321_v43 = vmul.f32 %v754_v41, %v307_v33 }
 0x2e8   :  { %v320_v44 = vmul.f32 %v756_v42, %v306_v34 }
 0x2e9   :  { %v323_v45 = vpack.c.bf16 %v321_v43, %v321_v43 }
 0x2ea   :  { %v322_v46 = vpack.c.bf16 %v320_v44, %v320_v44 }
 0x2eb   :  { %491 = vmatprep.mubr.bf16.mxu1 %v323_v45 }
 0x2ec   :  { %492 = vmatmul.mubr.bf16.vlgmr.msra.gmra.mrb[0].mxu1 %v322_v46 }
 0x3bf   :  { %v677_v47 = vpop.f32.mrb[0].mxu1 }
 0x3c0   :  { %v678_v49 = vpop.f32.mrb[1].mxu1 }
 0x3c1   :  { %v679_v50 = vadd.f32 %v678_v49, %v677_v47  ;;  %v680_v51 = vpop.f32.mrb[2].mxu1 }
 0x3c2   :  { %v681_v52 = vpop.f32.mrb[3].mxu1 }
 0x3c3   :  { %v494_v53 = vadd.f32 %v679_v50, %v638_v48 }
 0x3c5   :  { %v502_v54 = vsel %vm501_vm0, %v494_v53, 0.0  ;;  %v507_v55 = vmul.f32 %v494_v53, %v494_v53 }
 0x3c6   :  { %503 = vadd.xlane.f32.xlu1 %v502_v54 }
 0x3c7   :  { %v508_v56 = vsel %vm501_vm0, %v507_v55, 0.0 }
 0x3ca   :  { %509 = vadd.xlane.f32.xlu1 %v508_v56 }
 0x453   :  { %v504_v60 = vpop.xlane.xlu1 %503 }
 0x454   :  { %v506_v61 = vmul.f32 0.03125, %v504_v60 }
 0x456   :  { %v512_v63 = vmul.f32 %v506_v61, %v506_v61  ;;  %v516_v3 = vsub.f32 %v494_v53, %v506_v61 }
 0x457   :  { %v510_v62 = vpop.xlane.xlu1 %509 }
 0x458   :  { %v511_v0 = vmul.f32 0.03125, %v510_v62 }
 0x45a   :  { %v513_v1 = vsub.f32 %v511_v0, %v512_v63 }
 0x45c   :  { %v514_v2 = vadd.f32 1e-05, %v513_v1 }
 0x45e   :  { %757 = vrsqrt.f32 %v514_v2 }
 0x468   :  { %v758_v4 = vpop.eup %757 }
 0x469   :  { %v517_v6 = vmul.f32 %v758_v4, %v516_v3 }
 0x46b   :  { %v524_v8 = vmul.f32 %v655_v5, %v517_v6 }
 0x46d   :  { %v531_v9 = vadd.f32 %v656_v7, %v524_v8 }
 0x46f   :  { %759 = vtanh.f32 %v531_v9 }
 0x479   :  { %v760_v10 = vpop.eup %759 }
 0x47a   :  { %v533_v11 = vpack.c.bf16 %v760_v10, %v760_v10 }
 0x47c   :  { %691 = vmatmul.mubr.msk.bf16.vlgmr.msra.gmra.mrb[4].mxu0 %vm501_vm0, %v533_v11 }
 0x54f   :  { %v594_v13 = vpop.f32.mrb[4].mxu0 }
 0x550   :  { %v595_v14 = vadd.f32 %v657_v12, %v594_v13  ;;  %v692_v15 = vpop.f32.mrb[5].mxu0 }
 0x551   :  { %v597_v16 = vpop.f32.mrb[6].mxu0 }
 0x552   :  { %600 = vst [vmem:[#allocation2] sm:$0xff] %v595_v14  ;;  %v693_v17 = vpop.f32.mrb[7].mxu0 }
 0x553   :  { %772 = shalt.err (!%p769_p4)
}
 0x554   :  { %s773_s14 = scalar_lea.hbm %s1047_s15, 128 }
 0x555   :  { %p774_p5 = scmp.ne.s32.totalorder %s1047_s15, %s773_s14  ;;  %p777_p6 = scmp.lt.u32.totalorder %s773_s14, %s1047_s15 }
 0x557   :  { %p779_p7 = pnand %p777_p6, %p774_p5 }
 0x559   :  { %782 = shalt.err (!%p779_p7)
}
 0x55a   :  { %610 = dma.vmem_to_hbm [thread:$0]  %s608_s4, 128, %s1047_s15, [#allocation3]  }
 0x55b   :  { %783 = dma.done.wait [#allocation3], 128  }
 0x55c   :  { %784 = vsyncadd [#allocation3], 4294967168 }
 0x55d   :  { %614 = vsyncpa [#allocation3], 1 }

</bundles_post_ra>
